<compile_context>
chip_gen: v6e
topology: v6e:2x2x1
jax: 0.10.0
libtpu: 0.0.40
codegen_flags: <defaults>
</compile_context>

<pallas_src>
import functools

import jax
import jax.numpy as jnp
from jax.experimental import pallas as pl
from jax.experimental.pallas import tpu as pltpu

K = 3  # kernel_size of nn.MaxPool2d
S = 3  # stride of nn.MaxPool2d (== K, non-overlapping windows)


def _round_up(v, m):
    return -(-v // m) * m


def _maxpool_kernel(x_ref, selw_ref, o_ref, hbuf_ref, obuf_ref, *,
                    tc, hout, precision, per_k):
    """One channel-group block.

    x_ref   : (tc, H, W)        input faces for tc channels
    selw_ref: (3, W, Wout)      selw[d, i, j] = 1  iff  i == 3*j + d
    o_ref   : (tc, Hout, Wout)  pooled output faces
    hbuf_ref: (tc*Hout, W)      H-reduced rows (compute dtype)
    obuf_ref: (tc*Hout, Wout)   fully pooled rows (output dtype)
    """
    # ---- H direction: 3-tall window max + stride-3 row selection -----------
    # (plain loads + VPU max; wrapped / cross-channel rows are never touched)
    if per_k:
        # k-major row order: hbuf row = k*tc + c
        for k in range(hout):
            r0 = x_ref[:, S * k + 0, :]
            r1 = x_ref[:, S * k + 1, :]
            r2 = x_ref[:, S * k + 2, :]
            hm = jnp.maximum(jnp.maximum(r0, r1), r2)            # (tc, W)
            hbuf_ref[pl.ds(k * tc, tc), :] = hm.astype(hbuf_ref.dtype)
    else:
        # channel-major row order: hbuf row = c*hout + k
        for c in range(tc):
            r0 = x_ref[c, pl.ds(0, hout, stride=S), :]
            r1 = x_ref[c, pl.ds(1, hout, stride=S), :]
            r2 = x_ref[c, pl.ds(2, hout, stride=S), :]
            hm = jnp.maximum(jnp.maximum(r0, r1), r2)            # (Hout, W)
            hbuf_ref[pl.ds(c * hout, hout), :] = hm.astype(hbuf_ref.dtype)

    # ---- W direction: one 0/1 selection matmul per window offset (MXU) -----
    # TODO(synk): non-finite inputs poison rows via 0*inf / 0*NaN here.
    lhs = hbuf_ref[...]                                           # (tc*Hout, W)
    y0 = jnp.dot(lhs, selw_ref[0], precision=precision,
                 preferred_element_type=jnp.float32)
    y1 = jnp.dot(lhs, selw_ref[1], precision=precision,
                 preferred_element_type=jnp.float32)
    y2 = jnp.dot(lhs, selw_ref[2], precision=precision,
                 preferred_element_type=jnp.float32)
    obuf_ref[...] = jnp.maximum(jnp.maximum(y0, y1), y2).astype(obuf_ref.dtype)

    # ---- scatter rows into the (tc, Hout, Wout) output block ---------------
    if per_k:
        for k in range(hout):
            o_ref[:, k, :] = obuf_ref[pl.ds(k * tc, tc), :]
    else:
        for c in range(tc):
            o_ref[c] = obuf_ref[pl.ds(c * hout, hout), :]


def _choose_block_channels(nc, h, w, itemsize, budget_bytes=4 << 20,
                           target_steps=8):
    """Largest channels-per-block that divides nc, keeps the padded input
    block under `budget_bytes`, and keeps the grid >= target_steps long so the
    DMA pipeline has work to overlap and v7x can split it over both cores."""
    divisors = [d for d in range(1, nc + 1) if nc % d == 0]
    face_bytes = _round_up(h, 8) * _round_up(w, 128) * itemsize
    fitting = [d for d in divisors if d * face_bytes <= budget_bytes]
    if not fitting:
        fitting = [1]  # TODO(synk): H-tile oversized single-channel images.
    tc = max(fitting)
    cap = max(1, nc // min(target_steps, nc))
    capped = [d for d in divisors if d <= min(tc, cap)]
    if capped:
        tc = max(capped)
    return tc


def maxpool2d(x):
    """nn.MaxPool2d(kernel_size=3, stride=3, padding=0) on an NCHW tensor."""
    n, c, h, w = x.shape
    hout = (h - K) // S + 1
    wout = (w - K) // S + 1
    if hout <= 0 or wout <= 0:  # degenerate spatial dims -> empty output
        return jnp.zeros((n, c, max(hout, 0), max(wout, 0)), x.dtype)

    nc = n * c
    x3 = x.reshape(nc, h, w)  # free row-major reshape (no HBM rewrite)

    if x.dtype == jnp.bfloat16:
        compute_dtype = jnp.bfloat16                # native bf16 MXU pass
        precision = jax.lax.Precision.DEFAULT       # exact for 0/1 selection
    else:
        compute_dtype = jnp.float32
        precision = jax.lax.Precision.HIGHEST       # exact f32 selection

    itemsize = jnp.dtype(x.dtype).itemsize
    csize = jnp.dtype(compute_dtype).itemsize
    tc = _choose_block_channels(nc, h, w, itemsize)
    grid = (nc // tc,)
    # Use the loop with fewer iterations; the per-k path needs no strided ops.
    per_k = hout <= max(tc, 32)

    # 0/1 selection matrices implementing "pick lane 3j+d" on the MXU.
    lane = jnp.arange(w)[None, :, None]
    col = jnp.arange(wout)[None, None, :]
    off = jnp.arange(K)[:, None, None]
    selw = (lane == S * col + off).astype(compute_dtype)          # (3, W, Wout)

    # VMEM footprint (padded) -> vmem limit with margin, capped for v7x.
    in_blk = tc * _round_up(h, 8) * _round_up(w, 128) * itemsize
    out_blk = tc * _round_up(hout, 8) * _round_up(wout, 128) * itemsize
    sel_blk = K * _round_up(w, 8) * _round_up(wout, 128) * csize
    hbuf_b = _round_up(tc * hout, 8) * _round_up(w, 128) * csize
    obuf_b = _round_up(tc * hout, 8) * _round_up(wout, 128) * itemsize
    footprint = 2 * (in_blk + out_blk + sel_blk) + hbuf_b + obuf_b
    vmem_limit = int(min(56 << 20, max(32 << 20, 2 * footprint)))

    kernel = functools.partial(
        _maxpool_kernel, tc=tc, hout=hout, precision=precision, per_k=per_k)

    out = pl.pallas_call(
        kernel,
        out_shape=jax.ShapeDtypeStruct((nc, hout, wout), x.dtype),
        grid=grid,
        in_specs=[
            pl.BlockSpec((tc, h, w), lambda i: (i, 0, 0)),
            pl.BlockSpec((K, w, wout), lambda i: (0, 0, 0)),
        ],
        out_specs=pl.BlockSpec((tc, hout, wout), lambda i: (i, 0, 0)),
        scratch_shapes=[
            pltpu.VMEM((tc * hout, w), compute_dtype),
            pltpu.VMEM((tc * hout, wout), x.dtype),
        ],
        compiler_params=pltpu.CompilerParams(
            dimension_semantics=("parallel",),
            vmem_limit_bytes=vmem_limit,
        ),
    )(x3, selw)

    return out.reshape(n, c, hout, wout)


if __name__ == "__main__":
    key = jax.random.PRNGKey(0)
    # Small NCHW input consistent with the module: batch=2, channels=4, 16x16.
    x = jax.random.normal(key, (2, 4, 16, 16), dtype=jnp.float32)

    y = maxpool2d(x)
    jax.block_until_ready(y)

    # Independent reference (same semantics as torch.nn.MaxPool2d(3, 3)).
    ref = jax.lax.reduce_window(
        x, -jnp.inf, jax.lax.max,
        window_dimensions=(1, 1, K, K),
        window_strides=(1, 1, S, S),
        padding="VALID",
    )

    assert y.shape == (2, 4, 5, 5), y.shape
    assert y.dtype == x.dtype
    assert jnp.allclose(y, ref, atol=1e-6, rtol=1e-6), "Pallas maxpool mismatch"

    print("KERNEL_OK")
</pallas_src>

<mosaic_0001>
module attributes {stable_mosaic.version = 11 : i64} {
  func.func @_maxpool_kernel(%arg0: i32, %arg1: memref<1x16x16xf32, #tpu.memory_space<vmem>>, %arg2: memref<3x16x5xf32, #tpu.memory_space<vmem>>, %arg3: memref<1x5x5xf32, #tpu.memory_space<vmem>>, %arg4: memref<5x16xf32, #tpu.memory_space<vmem>>, %arg5: memref<5x5xf32, #tpu.memory_space<vmem>>) attributes {dimension_semantics = [#tpu.dimension_semantics<parallel>], iteration_bounds = array<i64: 8>, scalar_prefetch = 0 : i64, scratch_operands = 2 : i64, tpu.core_type = #tpu.core_type<tc>, window_params = [{transform_indices = @transform_0, window_bounds = array<i64: 1, 16, 16>}, {pipeline_mode = #tpu.pipeline_mode<synchronous>, transform_indices = @transform_1, window_bounds = array<i64: 3, 16, 5>}, {transform_indices = @transform_2, window_bounds = array<i64: 1, 5, 5>}]} {
    %c0 = arith.constant 0 : index
    %c0_0 = arith.constant 0 : index
    %c0_1 = arith.constant 0 : index
    %0 = vector.load %arg1[%c0, %c0_0, %c0_1] : memref<1x16x16xf32, #tpu.memory_space<vmem>>, vector<1x1x16xf32>
    %1 = vector.shape_cast %0 : vector<1x1x16xf32> to vector<1x16xf32>
    %c0_2 = arith.constant 0 : index
    %c1 = arith.constant 1 : index
    %c0_3 = arith.constant 0 : index
    %2 = vector.load %arg1[%c0_2, %c1, %c0_3] : memref<1x16x16xf32, #tpu.memory_space<vmem>>, vector<1x1x16xf32>
    %3 = vector.shape_cast %2 : vector<1x1x16xf32> to vector<1x16xf32>
    %c0_4 = arith.constant 0 : index
    %c2 = arith.constant 2 : index
    %c0_5 = arith.constant 0 : index
    %4 = vector.load %arg1[%c0_4, %c2, %c0_5] : memref<1x16x16xf32, #tpu.memory_space<vmem>>, vector<1x1x16xf32>
    %5 = vector.shape_cast %4 : vector<1x1x16xf32> to vector<1x16xf32>
    %6 = arith.maximumf %1, %3 : vector<1x16xf32>
    %7 = arith.maximumf %6, %5 : vector<1x16xf32>
    %c0_6 = arith.constant 0 : index
    %c0_7 = arith.constant 0 : index
    %8 = vector.load %arg4[%c0_6, %c0_7] : memref<5x16xf32, #tpu.memory_space<vmem>>, vector<1x16xf32>
    tpu.vector_store %arg4[%c0_6, %c0_7], %7 {strides = array<i32>} : memref<5x16xf32, #tpu.memory_space<vmem>>, vector<1x16xf32>,
    %c0_8 = arith.constant 0 : index
    %c3 = arith.constant 3 : index
    %c0_9 = arith.constant 0 : index
    %9 = vector.load %arg1[%c0_8, %c3, %c0_9] : memref<1x16x16xf32, #tpu.memory_space<vmem>>, vector<1x1x16xf32>
    %10 = vector.shape_cast %9 : vector<1x1x16xf32> to vector<1x16xf32>
    %c0_10 = arith.constant 0 : index
    %c4 = arith.constant 4 : index
    %c0_11 = arith.constant 0 : index
    %11 = vector.load %arg1[%c0_10, %c4, %c0_11] : memref<1x16x16xf32, #tpu.memory_space<vmem>>, vector<1x1x16xf32>
    %12 = vector.shape_cast %11 : vector<1x1x16xf32> to vector<1x16xf32>
    %c0_12 = arith.constant 0 : index
    %c5 = arith.constant 5 : index
    %c0_13 = arith.constant 0 : index
    %13 = vector.load %arg1[%c0_12, %c5, %c0_13] : memref<1x16x16xf32, #tpu.memory_space<vmem>>, vector<1x1x16xf32>
    %14 = vector.shape_cast %13 : vector<1x1x16xf32> to vector<1x16xf32>
    %15 = arith.maximumf %10, %12 : vector<1x16xf32>
    %16 = arith.maximumf %15, %14 : vector<1x16xf32>
    %c1_14 = arith.constant 1 : index
    %c0_15 = arith.constant 0 : index
    %17 = vector.load %arg4[%c1_14, %c0_15] : memref<5x16xf32, #tpu.memory_space<vmem>>, vector<1x16xf32>
    tpu.vector_store %arg4[%c1_14, %c0_15], %16 {strides = array<i32>} : memref<5x16xf32, #tpu.memory_space<vmem>>, vector<1x16xf32>,
    %c0_16 = arith.constant 0 : index
    %c6 = arith.constant 6 : index
    %c0_17 = arith.constant 0 : index
    %18 = vector.load %arg1[%c0_16, %c6, %c0_17] : memref<1x16x16xf32, #tpu.memory_space<vmem>>, vector<1x1x16xf32>
    %19 = vector.shape_cast %18 : vector<1x1x16xf32> to vector<1x16xf32>
    %c0_18 = arith.constant 0 : index
    %c7 = arith.constant 7 : index
    %c0_19 = arith.constant 0 : index
    %20 = vector.load %arg1[%c0_18, %c7, %c0_19] : memref<1x16x16xf32, #tpu.memory_space<vmem>>, vector<1x1x16xf32>
    %21 = vector.shape_cast %20 : vector<1x1x16xf32> to vector<1x16xf32>
    %c0_20 = arith.constant 0 : index
    %c8 = arith.constant 8 : index
    %c0_21 = arith.constant 0 : index
    %22 = vector.load %arg1[%c0_20, %c8, %c0_21] : memref<1x16x16xf32, #tpu.memory_space<vmem>>, vector<1x1x16xf32>
    %23 = vector.shape_cast %22 : vector<1x1x16xf32> to vector<1x16xf32>
    %24 = arith.maximumf %19, %21 : vector<1x16xf32>
    %25 = arith.maximumf %24, %23 : vector<1x16xf32>
    %c2_22 = arith.constant 2 : index
    %c0_23 = arith.constant 0 : index
    %26 = vector.load %arg4[%c2_22, %c0_23] : memref<5x16xf32, #tpu.memory_space<vmem>>, vector<1x16xf32>
    tpu.vector_store %arg4[%c2_22, %c0_23], %25 {strides = array<i32>} : memref<5x16xf32, #tpu.memory_space<vmem>>, vector<1x16xf32>,
    %c0_24 = arith.constant 0 : index
    %c9 = arith.constant 9 : index
    %c0_25 = arith.constant 0 : index
    %27 = vector.load %arg1[%c0_24, %c9, %c0_25] : memref<1x16x16xf32, #tpu.memory_space<vmem>>, vector<1x1x16xf32>
    %28 = vector.shape_cast %27 : vector<1x1x16xf32> to vector<1x16xf32>
    %c0_26 = arith.constant 0 : index
    %c10 = arith.constant 10 : index
    %c0_27 = arith.constant 0 : index
    %29 = vector.load %arg1[%c0_26, %c10, %c0_27] : memref<1x16x16xf32, #tpu.memory_space<vmem>>, vector<1x1x16xf32>
    %30 = vector.shape_cast %29 : vector<1x1x16xf32> to vector<1x16xf32>
    %c0_28 = arith.constant 0 : index
    %c11 = arith.constant 11 : index
    %c0_29 = arith.constant 0 : index
    %31 = vector.load %arg1[%c0_28, %c11, %c0_29] : memref<1x16x16xf32, #tpu.memory_space<vmem>>, vector<1x1x16xf32>
    %32 = vector.shape_cast %31 : vector<1x1x16xf32> to vector<1x16xf32>
    %33 = arith.maximumf %28, %30 : vector<1x16xf32>
    %34 = arith.maximumf %33, %32 : vector<1x16xf32>
    %c3_30 = arith.constant 3 : index
    %c0_31 = arith.constant 0 : index
    %35 = vector.load %arg4[%c3_30, %c0_31] : memref<5x16xf32, #tpu.memory_space<vmem>>, vector<1x16xf32>
    tpu.vector_store %arg4[%c3_30, %c0_31], %34 {strides = array<i32>} : memref<5x16xf32, #tpu.memory_space<vmem>>, vector<1x16xf32>,
    %c0_32 = arith.constant 0 : index
    %c12 = arith.constant 12 : index
    %c0_33 = arith.constant 0 : index
    %36 = vector.load %arg1[%c0_32, %c12, %c0_33] : memref<1x16x16xf32, #tpu.memory_space<vmem>>, vector<1x1x16xf32>
    %37 = vector.shape_cast %36 : vector<1x1x16xf32> to vector<1x16xf32>
    %c0_34 = arith.constant 0 : index
    %c13 = arith.constant 13 : index
    %c0_35 = arith.constant 0 : index
    %38 = vector.load %arg1[%c0_34, %c13, %c0_35] : memref<1x16x16xf32, #tpu.memory_space<vmem>>, vector<1x1x16xf32>
    %39 = vector.shape_cast %38 : vector<1x1x16xf32> to vector<1x16xf32>
    %c0_36 = arith.constant 0 : index
    %c14 = arith.constant 14 : index
    %c0_37 = arith.constant 0 : index
    %40 = vector.load %arg1[%c0_36, %c14, %c0_37] : memref<1x16x16xf32, #tpu.memory_space<vmem>>, vector<1x1x16xf32>
    %41 = vector.shape_cast %40 : vector<1x1x16xf32> to vector<1x16xf32>
    %42 = arith.maximumf %37, %39 : vector<1x16xf32>
    %43 = arith.maximumf %42, %41 : vector<1x16xf32>
    %c4_38 = arith.constant 4 : index
    %c0_39 = arith.constant 0 : index
    %44 = vector.load %arg4[%c4_38, %c0_39] : memref<5x16xf32, #tpu.memory_space<vmem>>, vector<1x16xf32>
    tpu.vector_store %arg4[%c4_38, %c0_39], %43 {strides = array<i32>} : memref<5x16xf32, #tpu.memory_space<vmem>>, vector<1x16xf32>,
    %c0_40 = arith.constant 0 : index
    %c0_41 = arith.constant 0 : index
    %45 = vector.load %arg4[%c0_40, %c0_41] : memref<5x16xf32, #tpu.memory_space<vmem>>, vector<5x16xf32>
    %c0_42 = arith.constant 0 : index
    %c0_43 = arith.constant 0 : index
    %c0_44 = arith.constant 0 : index
    %46 = vector.load %arg2[%c0_42, %c0_43, %c0_44] : memref<3x16x5xf32, #tpu.memory_space<vmem>>, vector<1x16x5xf32>
    %47 = vector.shape_cast %46 : vector<1x16x5xf32> to vector<16x5xf32>
    %cst = arith.constant dense<0.000000e+00> : vector<5x5xf32>
    %48 = tpu.matmul %45, %47, %cst {dimension_numbers = #tpu.dot_dimension_numbers<[1], [0], [0], [1], [0, 0, 1, 1], [], []>, precision = #tpu.contract_precision<fp32>} : vector<5x16xf32>, vector<16x5xf32>, vector<5x5xf32> -> vector<5x5xf32>
    %c1_45 = arith.constant 1 : index
    %c0_46 = arith.constant 0 : index
    %c0_47 = arith.constant 0 : index
    %49 = vector.load %arg2[%c1_45, %c0_46, %c0_47] : memref<3x16x5xf32, #tpu.memory_space<vmem>>, vector<1x16x5xf32>
    %50 = vector.shape_cast %49 : vector<1x16x5xf32> to vector<16x5xf32>
    %cst_48 = arith.constant dense<0.000000e+00> : vector<5x5xf32>
    %51 = tpu.matmul %45, %50, %cst_48 {dimension_numbers = #tpu.dot_dimension_numbers<[1], [0], [0], [1], [0, 0, 1, 1], [], []>, precision = #tpu.contract_precision<fp32>} : vector<5x16xf32>, vector<16x5xf32>, vector<5x5xf32> -> vector<5x5xf32>
    %c2_49 = arith.constant 2 : index
    %c0_50 = arith.constant 0 : index
    %c0_51 = arith.constant 0 : index
    %52 = vector.load %arg2[%c2_49, %c0_50, %c0_51] : memref<3x16x5xf32, #tpu.memory_space<vmem>>, vector<1x16x5xf32>
    %53 = vector.shape_cast %52 : vector<1x16x5xf32> to vector<16x5xf32>
    %cst_52 = arith.constant dense<0.000000e+00> : vector<5x5xf32>
    %54 = tpu.matmul %45, %53, %cst_52 {dimension_numbers = #tpu.dot_dimension_numbers<[1], [0], [0], [1], [0, 0, 1, 1], [], []>, precision = #tpu.contract_precision<fp32>} : vector<5x16xf32>, vector<16x5xf32>, vector<5x5xf32> -> vector<5x5xf32>
    %55 = arith.maximumf %48, %51 : vector<5x5xf32>
    %56 = arith.maximumf %55, %54 : vector<5x5xf32>
    %c0_53 = arith.constant 0 : index
    %c0_54 = arith.constant 0 : index
    %57 = vector.load %arg5[%c0_53, %c0_54] : memref<5x5xf32, #tpu.memory_space<vmem>>, vector<5x5xf32>
    tpu.vector_store %arg5[%c0_53, %c0_54], %56 {strides = array<i32>} : memref<5x5xf32, #tpu.memory_space<vmem>>, vector<5x5xf32>,
    %c0_55 = arith.constant 0 : index
    %c0_56 = arith.constant 0 : index
    %58 = vector.load %arg5[%c0_55, %c0_56] : memref<5x5xf32, #tpu.memory_space<vmem>>, vector<1x5xf32>
    %c0_57 = arith.constant 0 : index
    %c0_58 = arith.constant 0 : index
    %c0_59 = arith.constant 0 : index
    %59 = vector.load %arg3[%c0_57, %c0_58, %c0_59] : memref<1x5x5xf32, #tpu.memory_space<vmem>>, vector<1x1x5xf32>
    %60 = vector.shape_cast %59 : vector<1x1x5xf32> to vector<1x5xf32>
    %61 = vector.shape_cast %58 : vector<1x5xf32> to vector<1x1x5xf32>
    tpu.vector_store %arg3[%c0_57, %c0_58, %c0_59], %61 {strides = array<i32>} : memref<1x5x5xf32, #tpu.memory_space<vmem>>, vector<1x1x5xf32>,
    %c1_60 = arith.constant 1 : index
    %c0_61 = arith.constant 0 : index
    %62 = vector.load %arg5[%c1_60, %c0_61] : memref<5x5xf32, #tpu.memory_space<vmem>>, vector<1x5xf32>
    %c0_62 = arith.constant 0 : index
    %c1_63 = arith.constant 1 : index
    %c0_64 = arith.constant 0 : index
    %63 = vector.load %arg3[%c0_62, %c1_63, %c0_64] : memref<1x5x5xf32, #tpu.memory_space<vmem>>, vector<1x1x5xf32>
    %64 = vector.shape_cast %63 : vector<1x1x5xf32> to vector<1x5xf32>
    %65 = vector.shape_cast %62 : vector<1x5xf32> to vector<1x1x5xf32>
    tpu.vector_store %arg3[%c0_62, %c1_63, %c0_64], %65 {strides = array<i32>} : memref<1x5x5xf32, #tpu.memory_space<vmem>>, vector<1x1x5xf32>,
    %c2_65 = arith.constant 2 : index
    %c0_66 = arith.constant 0 : index
    %66 = vector.load %arg5[%c2_65, %c0_66] : memref<5x5xf32, #tpu.memory_space<vmem>>, vector<1x5xf32>
    %c0_67 = arith.constant 0 : index
    %c2_68 = arith.constant 2 : index
    %c0_69 = arith.constant 0 : index
    %67 = vector.load %arg3[%c0_67, %c2_68, %c0_69] : memref<1x5x5xf32, #tpu.memory_space<vmem>>, vector<1x1x5xf32>
    %68 = vector.shape_cast %67 : vector<1x1x5xf32> to vector<1x5xf32>
    %69 = vector.shape_cast %66 : vector<1x5xf32> to vector<1x1x5xf32>
    tpu.vector_store %arg3[%c0_67, %c2_68, %c0_69], %69 {strides = array<i32>} : memref<1x5x5xf32, #tpu.memory_space<vmem>>, vector<1x1x5xf32>,
    %c3_70 = arith.constant 3 : index
    %c0_71 = arith.constant 0 : index
    %70 = vector.load %arg5[%c3_70, %c0_71] : memref<5x5xf32, #tpu.memory_space<vmem>>, vector<1x5xf32>
    %c0_72 = arith.constant 0 : index
    %c3_73 = arith.constant 3 : index
    %c0_74 = arith.constant 0 : index
    %71 = vector.load %arg3[%c0_72, %c3_73, %c0_74] : memref<1x5x5xf32, #tpu.memory_space<vmem>>, vector<1x1x5xf32>
    %72 = vector.shape_cast %71 : vector<1x1x5xf32> to vector<1x5xf32>
    %73 = vector.shape_cast %70 : vector<1x5xf32> to vector<1x1x5xf32>
    tpu.vector_store %arg3[%c0_72, %c3_73, %c0_74], %73 {strides = array<i32>} : memref<1x5x5xf32, #tpu.memory_space<vmem>>, vector<1x1x5xf32>,
    %c4_75 = arith.constant 4 : index
    %c0_76 = arith.constant 0 : index
    %74 = vector.load %arg5[%c4_75, %c0_76] : memref<5x5xf32, #tpu.memory_space<vmem>>, vector<1x5xf32>
    %c0_77 = arith.constant 0 : index
    %c4_78 = arith.constant 4 : index
    %c0_79 = arith.constant 0 : index
    %75 = vector.load %arg3[%c0_77, %c4_78, %c0_79] : memref<1x5x5xf32, #tpu.memory_space<vmem>>, vector<1x1x5xf32>
    %76 = vector.shape_cast %75 : vector<1x1x5xf32> to vector<1x5xf32>
    %77 = vector.shape_cast %74 : vector<1x5xf32> to vector<1x1x5xf32>
    tpu.vector_store %arg3[%c0_77, %c4_78, %c0_79], %77 {strides = array<i32>} : memref<1x5x5xf32, #tpu.memory_space<vmem>>, vector<1x1x5xf32>,
    return
  }
  func.func @transform_0(%arg0: i32) -> (i32, i32, i32) {
    %c0_i32 = arith.constant 0 : i32
    %c0_i32_0 = arith.constant 0 : i32
    %c0_i32_1 = arith.constant 0 : i32
    return %arg0, %c0_i32, %c0_i32_0 : i32, i32, i32
  }
  func.func @transform_1(%arg0: i32) -> (i32, i32, i32) {
    %c0_i32 = arith.constant 0 : i32
    %c0_i32_0 = arith.constant 0 : i32
    %c0_i32_1 = arith.constant 0 : i32
    %c0_i32_2 = arith.constant 0 : i32
    return %c0_i32, %c0_i32_0, %c0_i32_1 : i32, i32, i32
  }
  func.func @transform_2(%arg0: i32) -> (i32, i32, i32) {
    %c0_i32 = arith.constant 0 : i32
    %c0_i32_0 = arith.constant 0 : i32
    %c0_i32_1 = arith.constant 0 : i32
    return %arg0, %c0_i32, %c0_i32_0 : i32, i32, i32
  }
}

</mosaic_0001>

<bundles_post_ra>
// kernel: tpu_custom_call.1
= control target key start
LH: loop header
LB: loop body
LE: loop exit
PB: predicated region body
PF: predicated region fallthrough
CT: control target
= control target key end

     0   :  { %7 = vsyncpa [#allocation5], 0  ;;  %s2301_s0 = inlined_call_operand.hbm [shape: f32[8,16,16], index: 0, kind: input, shape index: {}]   ;;  %s2302_s1 = inlined_call_operand.vmem [shape: f32[3,16,5], index: 1, kind: input, shape index: {}]   ;;  %s2303_s2 = inlined_call_operand.vmem [shape: f32[8,5,5], index: 2, kind: output, shape index: {}]  }
   0x1   :  { %9 = vsyncpa [#allocation5 + $0x1], 0  ;;  %s1986_s9 = smov 0   ;;  %s1988_s10 = smov 0  }
   0x2   :  { %s1990_s11 = smov 0   ;;  %s1992_s12 = smov 0  }
   0x3 LB: > { %s2005_s13 = sadd.s32 4294967295, %s1964_s12   ;;  %s2008_s14 = sadd.s32 1, %s1964_s12   ;;  %s1964_s12 = sphi %s1992_s12, %s2312_s12   ;;  %s1960_s11 = sphi %s1990_s11, %s2311_s11   ;;  %s1956_s10 = sphi %s1988_s10, %s2310_s10   ;;  %s1952_s9 = sphi %s1986_s9, %s2309_s9  }
   0x4   : > { %s19_s15 = ssub.s32 %s1964_s12, %s2008_s14  ;;  %s22_s16 = sadd.s32 1, %s1960_s11 }
   0x5   : > { %p20_p0 = scmp.eq.s32.totalorder %s19_s15, 0  ;;  %p29_p1 = scmp.ne.s32.totalorder %s1960_s11, %s1956_s10 }
   0x6   : > { %p30_p2 = scmp.eq.s32.totalorder %s1964_s12, 0  ;;  %p35_p3 = scmp.ne.s32.totalorder %s1956_s10, %s1952_s9 }
   0x7   : > { %s2018_s17 = scalar_select %p20_p0, %s1960_s11, %s22_s16  }
   0x8   : > { %p31_p4 = por %p30_p2, %p29_p1  ;;  %p36_p5 = scmp.eq.s32.totalorder %s2005_s13, 0 }
   0x9   : > { %p1865_p6 = scmp.lt.s32.totalorder %s1964_s12, 8  ;;  %s109_s19 = sand.u32 1, %s1960_s11  }
   0xa   : > { %p2022_p7 = por %p36_p5, %p35_p3  ;;  %s1666_s20 = sshll.u32 %s109_s19, 4 }
   0xb   : > { %s1678_s21 = sshll.u32 %s1964_s12, 8  ;;  %s113_s25 = scalar_lea.vmem [#allocation4], %s1666_s20 }
   0xc   : > { %s2305_s18 = scalar_select %p2022_p7, 1, 0 }
   0xd   : > { %s2031_s24 = scalar_lea.hbm %s2301_s0, %s1678_s21  ;;  %s120_s26 = sshll.u32 %s113_s25, 4  ;;  %s2033_s26 = int_to_ptr.vmem [resolvable:$true] %s120_s26 }
   0xe   : > { %p2035_p8 = pnand %p1865_p6, %p31_p4  ;;  %s2040_s28 = scalar_lea.sflag [#allocation5], %s109_s19 }
   0xf   : > { %s1902_s29 = scalar_lea.hbm %s2031_s24, 256  ;;  %s1907_s4 = scalar_lea.hbm %s2301_s0, 2048 }
  0x10   : > { %p1903_p10 = scmp.ne.s32.totalorder %s2031_s24, %s1902_s29  ;;  %p1904_p11 = pneg %p2035_p8 }
  0x11   : > { %p1908_p0 = scmp.lt.s32.totalorder %s2031_s24, %s2301_s0  ;;  %p1909_p1 = scmp.lt.s32.totalorder %s1907_s4, %s1902_s29 }
  0x12   : > { %p1905_p12 = pnand %p1904_p11, %p1903_p10 }
  0x13   : > { %p1910_p2 = por %p1909_p1, %p1908_p0 }
  0x14   : > { %p1906_p13 = pneg %p1905_p12 }
  0x16   : > { %p1911_p3 = pnand %p1910_p2, %p1906_p13 }
  0x18   : > { %1914 = shalt.err (!%p1911_p3)
}
  0x19   : > { %s1915_s7 = scalar_lea.vmem %s2033_s26, 256  ;;  %s1966_s8 = smov [#allocation4]  }
  0x1a   : > { %p1916_p4 = scmp.ne.s32.totalorder %s2033_s26, %s1915_s7  ;;  %s1920_s9 = sshll.u32 %s1966_s8, 4  ;;  %s1921_s9 = int_to_ptr.vmem [resolvable:$false] %s1920_s9 }
  0x1b   : > { %s1922_s15 = scalar_lea.vmem %s1921_s9, 512  ;;  %p1923_p10 = scmp.lt.s32.totalorder %s2033_s26, %s1921_s9 }
  0x1c   : > { %p1918_p5 = pnand %p1916_p4, %p1904_p11  ;;  %p1924_p12 = scmp.lt.s32.totalorder %s1922_s15, %s1915_s7 }
  0x1e   : > { %p1919_p6 = pneg %p1918_p5  ;;  %p1925_p9 = por %p1924_p12, %p1923_p10 }
  0x20   : > { %p1926_p7 = pnand %p1925_p9, %p1919_p6 }
  0x22   : > { %1929 = shalt.err (!%p1926_p7)
}
  0x23   : > { %s1967_s16 = smov 128   ;;  %s1968_s19 = smov 8  }
  0x24   : > { %1864 = dma.hbm_to_vmem [thread:$0]  (!%p2035_p8), %s2031_s24, 256, %s2033_s26, %s2040_s28, %s1967_s16, %s1967_s16, %s1968_s19  }
  0x25   : > { %p128_p11 = scmp.lt.s32.totalorder %s1964_s12, 9  ;;  %p2307_p13 = scmp.ge.s32.totalorder %s1964_s12, 1 }
  0x27   : > { %p129_p0 = pnand %p2307_p13, %p128_p11 }
  0x28   : > { %s134_s20 = sand.u32 (!%p129_p0), 1, %s1956_s10   ;;  %p2308_p7 = scmp.ne.s32.totalorder (!%p129_p0), %s2305_s18, 0 }
  0x29   : > { %132 = sbr.rel (%p129_p0) target bundleno = 328 (0x148), region = 28  ;;  %s1670_s21 = sshll.u32 (!%p129_p0), %s134_s20, 4 }
  0x2a   : > { %s135_s22 = scalar_lea.sflag (!%p129_p0), [#allocation5], %s134_s20  ;;  %s2065_s23 = scalar_lea.vmem (!%p129_p0), [#allocation4], %s1670_s21 }
  0x2e   : > { %1947 = dma.done.wait (%p2308_p7), %s135_s22, 256  }
  0x2f   : > { %1949 = vsyncadd (%p2308_p7), %s135_s22, 4294967040  ;;  %v1969_v0 = vmov 0.0   ;;  %vm1970_vm0 = vmmov 0   ;;  %v195_v1 = vld [vmem:[%s2302_s1 + $0x8] sm:$0xff]  ;;  %v194_v2 = vld [vmem:[%s2302_s1] sm:$0xff]  ;;  %vm167_vm1 = vcmask 122880  }
  0x30   : > { %1733 = vmatprep.subr.mxu0 %v1969_v0  ;;  %1740 = vmatprep.subr.mxu1 %v1969_v0  ;;  %v162_v3 = vld [vmem:[%s2065_s23] sm:$0x1]  ;;  %v2084_v4 = vand.u32 4294901760, %v195_v1  ;;  %v2086_v5 = vand.u32 4294901760, %v194_v2  ;;  %v163_v6 = vld [vmem:[%s2065_s23 + $0x1] sm:$0x1] }
  0x31   : > { %1737 = vmatprep.mubr.msk.f32.mxu0 %vm1970_vm0, %v1969_v0  ;;  %1744 = vmatprep.mubr.msk.f32.mxu1 %vm1970_vm0, %v1969_v0  ;;  %v164_v7 = vld [vmem:[%s2065_s23 + $0x2] sm:$0x1]  ;;  %v165_v8 = vmax.f32 %v162_v3, %v163_v6  ;;  %v169_v9 = vld [vmem:[%s2065_s23 + $0x3] sm:$0x1]  ;;  %v170_v10 = vld [vmem:[%s2065_s23 + $0x4] sm:$0x1] }
  0x32   : > { %v171_v11 = vld [vmem:[%s2065_s23 + $0x5] sm:$0x1]  ;;  %1734 = vmatpush3.msra.mxu0 %v2084_v4  ;;  %v2095_v12 = vsub.f32 %v195_v1, %v2084_v4  ;;  %v2098_v13 = vsub.f32 %v194_v2, %v2086_v5  ;;  %v172_v14 = vmax.f32 %v169_v9, %v170_v10  ;;  %v175_v15 = vld [vmem:[%s2065_s23 + $0x6] sm:$0x1]  ;;  %v176_v16 = vld [vmem:[%s2065_s23 + $0x7] sm:$0x1] }
  0x33   : > { %v177_v17 = vld [vmem:[%s2065_s23 + $0x8] sm:$0x1]  ;;  %1735 = vmatprep.subr.mxu0 %v1969_v0  ;;  %v166_v18 = vmax.f32 %v165_v8, %v164_v7  ;;  %v178_v19 = vmax.f32 %v175_v15, %v176_v16  ;;  %v181_v20 = vld [vmem:[%s2065_s23 + $0x9] sm:$0x1]  ;;  %v182_v21 = vld [vmem:[%s2065_s23 + $0xa] sm:$0x1] }
  0x34   : > { %v183_v22 = vld [vmem:[%s2065_s23 + $0xb] sm:$0x1]  ;;  %v308_v23 = vand.u32 4294901760, %v2095_v12  ;;  %1736 = vmatpush3.msra.mxu0 %v2086_v5  ;;  %v315_v24 = vand.u32 4294901760, %v2098_v13  ;;  %v173_v25 = vmax.f32 %v172_v14, %v171_v11  ;;  %v184_v26 = vmax.f32 %v181_v20, %v182_v21  ;;  %v187_v27 = vld [vmem:[%s2065_s23 + $0xc] sm:$0x1] }
  0x35   : > { %v188_v28 = vld [vmem:[%s2065_s23 + $0xd] sm:$0x1]  ;;  %1747 = vmatprep.subr.mxu0 %v1969_v0  ;;  %168 = vst.msk [vmem:[#allocation2] sm:$0x1] %vm167_vm1, %v166_v18  ;;  %v179_v29 = vmax.f32 %v178_v19, %v177_v17  ;;  %v189_v30 = vld [vmem:[%s2065_s23 + $0xe] sm:$0x1] }
  0x36   : > { %v190_v31 = vmax.f32 %v187_v27, %v188_v28  ;;  %v309_v32 = vsub.f32 %v2095_v12, %v308_v23  ;;  %v316_v33 = vsub.f32 %v2098_v13, %v315_v24  ;;  %174 = vst.msk [vmem:[#allocation2 + $0x1] sm:$0x1] %vm167_vm1, %v173_v25  ;;  %v185_v34 = vmax.f32 %v184_v26, %v183_v22  ;;  %v1673_v38 = vld [vmem:[%s2302_s1 + $0x18] sm:$0xff]  ;;  %v1672_v40 = vld [vmem:[%s2302_s1 + $0x10] sm:$0xff]  ;;  %v1675_v57 = vld [vmem:[%s2302_s1 + $0x28] sm:$0xff]  ;;  %p158_p8 = scmp.lt.s32.totalorder %s2005_s13, 7 }
  0x37   : > { %180 = vst.msk [vmem:[#allocation2 + $0x2] sm:$0x1] %vm167_vm1, %v179_v29  ;;  %v2129_v39 = vand.u32 4294901760, %v1673_v38  ;;  %vm196_vm2 = vcmask 130048   ;;  %v2138_v42 = vand.u32 4294901760, %v1672_v40  ;;  %v1674_v58 = vld [vmem:[%s2302_s1 + $0x20] sm:$0xff] }
  0x38   : > { %v191_v35 = vmax.f32 %v190_v31, %v189_v30  ;;  %v310_v36 = vand.u32 4294901760, %v309_v32  ;;  %v317_v37 = vand.u32 4294901760, %v316_v33  ;;  %186 = vst.msk [vmem:[#allocation2 + $0x3] sm:$0x1] %vm167_vm1, %v185_v34  ;;  %v2198_v59 = vand.u32 4294901760, %v1675_v57  ;;  %s2314_s13 = smov (!%p158_p8, %s2005_s13), 7 }
  0x39   : > { %v2136_v41 = vsub.f32 %v1673_v38, %v2129_v39  ;;  %v2144_v47 = vsub.f32 %v1672_v40, %v2138_v42  ;;  %v2204_v60 = vand.u32 4294901760, %v1674_v58  ;;  %vm1585_vm3 = vcmask 36864   ;;  %s1671_s6 = sshll.u32 %s2314_s13, 3 }
  0x3a   : > { %192 = vst.msk [vmem:[#allocation2 + $0x4] sm:$0x1] %vm167_vm1, %v191_v35  ;;  %1741 = vmatpush3.msra.mxu1 %v310_v36  ;;  %v1231_v61 = vsub.f32 %v1675_v57, %v2198_v59  ;;  %s161_s9 = scalar_lea.vmem %s2303_s2, %s1671_s6  ;;  %vm1588_vm4 = vcmask 32768  }
  0x3b   : > { %1742 = vmatprep.subr.mxu1 %v1969_v0  ;;  %v770_v46 = vand.u32 4294901760, %v2136_v41  ;;  %v777_v51 = vand.u32 4294901760, %v2144_v47  ;;  %v1238_v62 = vsub.f32 %v1674_v58, %v2204_v60 }
  0x3c   : > { %1743 = vmatpush3.msra.mxu1 %v317_v37  ;;  %v1232_v63 = vand.u32 4294901760, %v1231_v61 }
  0x3d   : > { %1754 = vmatprep.subr.mxu1 %v1969_v0  ;;  %v771_v50 = vsub.f32 %v2136_v41, %v770_v46  ;;  %v778_v55 = vsub.f32 %v2144_v47, %v777_v51  ;;  %v1239_v1 = vand.u32 4294901760, %v1238_v62 }
  0x3e   : > { %v1233_v2 = vsub.f32 %v1231_v61, %v1232_v63 }
  0x3f   : > { %v772_v54 = vand.u32 4294901760, %v771_v50  ;;  %v779_v56 = vand.u32 4294901760, %v778_v55  ;;  %v1240_v3 = vsub.f32 %v1238_v62, %v1239_v1 }
  0x41   : > { %v193_v43 = vld [vmem:[#allocation2] sm:$0x1f] }
  0x42   : > { %v198_v44 = vsel %vm196_vm2, %v193_v43, 0 }
  0x43   : > { %v2140_v45 = vand.u32 4294901760, %v198_v44 }
  0x45   : > { %v2147_v48 = vsub.f32 %v198_v44, %v2140_v45  ;;  %1745 = vmatmul.mubr.f32.vlgmr.msra.gmra.mxu1 %v2140_v45 }
  0x46   : > { %1755 = vmatpush3.msra.mxu1 %v2084_v4  ;;  %1758 = vmatprep.mubr.msk.f32.mxu1 %vm1970_vm0, %v1969_v0 }
  0x47   : > { %v2154_v49 = vand.u32 4294901760, %v2147_v48  ;;  %1756 = vmatprep.subr.mxu1 %v1969_v0 }
  0x48   : > { %1757 = vmatpush3.msra.mxu1 %v2086_v5 }
  0x49   : > { %v270_v52 = vsub.f32 %v2147_v48, %v2154_v49  ;;  %1759 = vmatmul.mubr.f32.vlgmr.msra.gmra.mxu1 %v2154_v49  ;;  %1768 = vmatprep.subr.mxu1 %v1969_v0 }
  0x4a   : > { %1769 = vmatpush3.msra.mxu1 %v2084_v4  ;;  %1772 = vmatprep.mubr.msk.f32.mxu1 %vm1970_vm0, %v1969_v0  ;;  %v1234_v4 = vand.u32 4294901760, %v1233_v2 }
  0x4b   : > { %v2169_v53 = vand.u32 4294901760, %v270_v52  ;;  %1770 = vmatprep.subr.mxu1 %v1969_v0 }
  0x4c   : > { %1771 = vmatpush3.msra.mxu1 %v2086_v5  ;;  %v1241_v5 = vand.u32 4294901760, %v1240_v3 }
  0x4d   : > { %1738 = vmatmul.mubr.f32.vlgmr.msra.gmra.mxu0 %v2169_v53  ;;  %1773 = vmatmul.mubr.f32.vlgmr.msra.gmra.mxu1 %v2140_v45 }
  0x4e   : > { %1748 = vmatpush3.msra.mxu0 %v2095_v12  ;;  %1751 = vmatprep.mubr.msk.f32.mxu0 %vm1970_vm0, %v1969_v0 }
  0x4f   : > { %1749 = vmatprep.subr.mxu0 %v1969_v0  ;;  %1782 = vmatprep.subr.mxu1 %v1969_v0 }
  0x50   : > { %1750 = vmatpush3.msra.mxu0 %v2098_v13  ;;  %1783 = vmatpush3.msra.mxu1 %v772_v54 }
  0x51   : > { %1761 = vmatprep.subr.mxu0 %v1969_v0  ;;  %1752 = vmatmul.mubr.f32.vlgmr.msra.gmra.mxu0 %v2147_v48 }
  0x52   : > { %1762 = vmatpush3.msra.mxu0 %v308_v23  ;;  %1765 = vmatprep.mubr.msk.f32.mxu0 %vm1970_vm0, %v1969_v0 }
  0x53   : > { %1763 = vmatprep.subr.mxu0 %v1969_v0  ;;  %1784 = vmatprep.subr.mxu1 %v1969_v0 }
  0x54   : > { %1764 = vmatpush3.msra.mxu0 %v315_v24  ;;  %1785 = vmatpush3.msra.mxu1 %v779_v56 }
  0x55   : > { %1775 = vmatprep.subr.mxu0 %v1969_v0  ;;  %1766 = vmatmul.mubr.f32.vlgmr.msra.gmra.mxu0 %v2140_v45 }
  0x56   : > { %1776 = vmatpush3.msra.mxu0 %v2129_v39  ;;  %1779 = vmatprep.mubr.msk.f32.mxu0 %vm1970_vm0, %v1969_v0 }
  0x57   : > { %1777 = vmatprep.subr.mxu0 %v1969_v0  ;;  %1786 = vmatprep.mubr.msk.f32.mxu1 %vm1970_vm0, %v1969_v0 }
  0x58   : > { %1778 = vmatpush3.msra.mxu0 %v2138_v42  ;;  %1787 = vmatmul.mubr.f32.vlgmr.msra.gmra.mxu1 %v2140_v45 }
  0x59   : > { %1789 = vmatprep.subr.mxu0 %v1969_v0  ;;  %1780 = vmatmul.mubr.f32.vlgmr.msra.gmra.mxu0 %v2169_v53 }
  0x5a   : > { %1790 = vmatpush3.msra.mxu0 %v2136_v41  ;;  %1796 = vmatprep.subr.mxu1 %v1969_v0 }
  0x5b   : > { %1791 = vmatprep.subr.mxu0 %v1969_v0  ;;  %1797 = vmatpush3.msra.mxu1 %v2129_v39 }
  0x5c   : > { %1792 = vmatpush3.msra.mxu0 %v2144_v47  ;;  %1798 = vmatprep.subr.mxu1 %v1969_v0 }
  0x5d   : > { %1793 = vmatprep.mubr.msk.f32.mxu0 %vm1970_vm0, %v1969_v0  ;;  %1799 = vmatpush3.msra.mxu1 %v2138_v42 }
  0x5e   : > { %1800 = vmatprep.mubr.msk.f32.mxu1 %vm1970_vm0, %v1969_v0  ;;  %1803 = vmatprep.subr.mxu0 %v1969_v0 }
  0x5f   : > { %1794 = vmatmul.mubr.f32.vlgmr.msra.gmra.mxu0 %v2147_v48  ;;  %1801 = vmatmul.mubr.f32.vlgmr.msra.gmra.mxu1 %v2154_v49 }
  0x60   : > { %1804 = vmatpush3.msra.mxu0 %v770_v46  ;;  %1810 = vmatprep.subr.mxu1 %v1969_v0 }
  0x61   : > { %1805 = vmatprep.subr.mxu0 %v1969_v0  ;;  %1811 = vmatpush3.msra.mxu1 %v2129_v39 }
  0x62   : > { %1806 = vmatpush3.msra.mxu0 %v777_v51  ;;  %1812 = vmatprep.subr.mxu1 %v1969_v0 }
  0x63   : > { %1807 = vmatprep.mubr.msk.f32.mxu0 %vm1970_vm0, %v1969_v0  ;;  %1813 = vmatpush3.msra.mxu1 %v2138_v42 }
  0x64   : > { %1814 = vmatprep.mubr.msk.f32.mxu1 %vm1970_vm0, %v1969_v0  ;;  %1817 = vmatprep.subr.mxu0 %v1969_v0 }
  0x65   : > { %1808 = vmatmul.mubr.f32.vlgmr.msra.gmra.mxu0 %v2140_v45  ;;  %1815 = vmatmul.mubr.f32.vlgmr.msra.gmra.mxu1 %v2140_v45 }
  0x66   : > { %1818 = vmatpush3.msra.mxu0 %v2198_v59  ;;  %1824 = vmatprep.subr.mxu1 %v1969_v0 }
  0x67   : > { %1819 = vmatprep.subr.mxu0 %v1969_v0  ;;  %1825 = vmatpush3.msra.mxu1 %v1234_v4 }
  0x68   : > { %1820 = vmatpush3.msra.mxu0 %v2204_v60  ;;  %1826 = vmatprep.subr.mxu1 %v1969_v0 }
  0x69   : > { %1821 = vmatprep.mubr.msk.f32.mxu0 %vm1970_vm0, %v1969_v0  ;;  %1827 = vmatpush3.msra.mxu1 %v1241_v5 }
  0x6a   : > { %1828 = vmatprep.mubr.msk.f32.mxu1 %vm1970_vm0, %v1969_v0  ;;  %1831 = vmatprep.subr.mxu0 %v1969_v0 }
  0x6b   : > { %1822 = vmatmul.mubr.f32.vlgmr.msra.gmra.mxu0 %v2169_v53  ;;  %1829 = vmatmul.mubr.f32.vlgmr.msra.gmra.mxu1 %v2140_v45 }
  0x6c   : > { %1832 = vmatpush3.msra.mxu0 %v1231_v61  ;;  %1838 = vmatprep.subr.mxu1 %v1969_v0 }
  0x6d   : > { %1833 = vmatprep.subr.mxu0 %v1969_v0  ;;  %1839 = vmatpush3.msra.mxu1 %v2198_v59 }
  0x6e   : > { %1834 = vmatpush3.msra.mxu0 %v1238_v62  ;;  %1840 = vmatprep.subr.mxu1 %v1969_v0 }
  0x6f   : > { %1835 = vmatprep.mubr.msk.f32.mxu0 %vm1970_vm0, %v1969_v0  ;;  %1841 = vmatpush3.msra.mxu1 %v2204_v60 }
  0x70   : > { %1842 = vmatprep.mubr.msk.f32.mxu1 %vm1970_vm0, %v1969_v0  ;;  %1845 = vmatprep.subr.mxu0 %v1969_v0 }
  0x71   : > { %1836 = vmatmul.mubr.f32.vlgmr.msra.gmra.mxu0 %v2147_v48  ;;  %1843 = vmatmul.mubr.f32.vlgmr.msra.gmra.mxu1 %v2154_v49 }
  0x72   : > { %1846 = vmatpush3.msra.mxu0 %v1232_v63  ;;  %1852 = vmatprep.subr.mxu1 %v1969_v0 }
  0x73   : > { %1847 = vmatprep.subr.mxu0 %v1969_v0  ;;  %1853 = vmatpush3.msra.mxu1 %v2198_v59 }
  0x74   : > { %1848 = vmatpush3.msra.mxu0 %v1239_v1  ;;  %1854 = vmatprep.subr.mxu1 %v1969_v0 }
  0x75   : > { %1849 = vmatprep.mubr.msk.f32.mxu0 %vm1970_vm0, %v1969_v0  ;;  %1855 = vmatpush3.msra.mxu1 %v2204_v60 }
  0x76   : > { %1856 = vmatprep.mubr.msk.f32.mxu1 %vm1970_vm0, %v1969_v0  ;;  %1850 = vmatmul.mubr.f32.vlgmr.msra.gmra.mxu0 %v2140_v45 }
  0x77   : > { %1857 = vmatmul.mubr.f32.vlgmr.msra.gmra.mxu1 %v2140_v45 }
 0x105   : > { %v354_v6 = vpop.f32.mrf.mxu1 }
 0x107   : > { %v1746_v7 = vpop.f32.mrf.mxu1 }
 0x109   : > { %v505_v8 = vpop.f32.mrf.mxu1 }
 0x10b   : > { %v1760_v9 = vpop.f32.mrf.mxu1 }
 0x10d   : > { %v273_v10 = vpop.f32.mrf.mxu0  ;;  %v655_v11 = vpop.f32.mrf.mxu1 }
 0x10e   : > { %v355_v30 = vadd.f32 %v354_v6, %v273_v10 }
 0x10f   : > { %v1739_v12 = vpop.f32.mrf.mxu0  ;;  %v1774_v13 = vpop.f32.mrf.mxu1 }
 0x111   : > { %v430_v14 = vpop.f32.mrf.mxu0 }
 0x112   : > { %v431_v32 = vadd.f32 %v430_v14, %v355_v30 }
 0x113   : > { %v1753_v15 = vpop.f32.mrf.mxu0 }
 0x114   : > { %v506_v38 = vadd.f32 %v505_v8, %v431_v32 }
 0x115   : > { %v582_v16 = vpop.f32.mrf.mxu0 }
 0x116   : > { %v583_v44 = vadd.f32 %v582_v16, %v506_v38 }
 0x117   : > { %v1767_v17 = vpop.f32.mrf.mxu0 }
 0x118   : > { %v816_v18 = vpop.f32.mrf.mxu1  ;;  %v656_v50 = vadd.f32 %v655_v11, %v583_v44 }
 0x119   : > { %v735_v19 = vpop.f32.mrf.mxu0 }
 0x11a   : > { %v1788_v20 = vpop.f32.mrf.mxu1  ;;  %v817_v27 = vadd.f32 %v816_v18, %v735_v19 }
 0x11b   : > { %v1781_v0 = vpop.f32.mrf.mxu0 }
 0x11f   : > { %v892_v21 = vpop.f32.mrf.mxu0  ;;  %v967_v22 = vpop.f32.mrf.mxu1 }
 0x120   : > { %v893_v31 = vadd.f32 %v892_v21, %v817_v27 }
 0x121   : > { %v1795_v23 = vpop.f32.mrf.mxu0  ;;  %v1802_v24 = vpop.f32.mrf.mxu1 }
 0x122   : > { %v968_v35 = vadd.f32 %v967_v22, %v893_v31 }
 0x125   : > { %v1044_v25 = vpop.f32.mrf.mxu0  ;;  %v1117_v26 = vpop.f32.mrf.mxu1 }
 0x126   : > { %v1045_v40 = vadd.f32 %v1044_v25, %v968_v35 }
 0x127   : > { %v1809_v28 = vpop.f32.mrf.mxu0  ;;  %v1816_v29 = vpop.f32.mrf.mxu1 }
 0x128   : > { %v1118_v48 = vadd.f32 %v1117_v26, %v1045_v40 }
 0x12a   : > { %v1583_v54 = vmax.f32 %v656_v50, %v1118_v48 }
 0x12b   : > { %v1197_v33 = vpop.f32.mrf.mxu0  ;;  %v1278_v34 = vpop.f32.mrf.mxu1 }
 0x12c   : > { %v1279_v39 = vadd.f32 %v1278_v34, %v1197_v33 }
 0x12d   : > { %v1823_v36 = vpop.f32.mrf.mxu0  ;;  %v1830_v37 = vpop.f32.mrf.mxu1 }
 0x131   : > { %v1354_v41 = vpop.f32.mrf.mxu0  ;;  %v1429_v42 = vpop.f32.mrf.mxu1 }
 0x132   : > { %v1355_v43 = vadd.f32 %v1354_v41, %v1279_v39 }
 0x133   : > { %v1837_v45 = vpop.f32.mrf.mxu0  ;;  %v1844_v46 = vpop.f32.mrf.mxu1 }
 0x134   : > { %v1430_v47 = vadd.f32 %v1429_v42, %v1355_v43 }
 0x136   : > { %v1506_v49 = vpop.f32.mrf.mxu0 }
 0x137   : > { %v1507_v51 = vadd.f32 %v1506_v49, %v1430_v47  ;;  %v1579_v52 = vpop.f32.mrf.mxu1 }
 0x138   : > { %v1851_v53 = vpop.f32.mrf.mxu0 }
 0x139   : > { %v1580_v55 = vadd.f32 %v1579_v52, %v1507_v51  ;;  %v1858_v56 = vpop.f32.mrf.mxu1 }
 0x13b   : > { %v1584_v57 = vmax.f32 %v1583_v54, %v1580_v55 }
 0x13d   : > { %1586 = vst.msk [vmem:[#allocation3] sm:$0x1f] %vm1585_vm3, %v1584_v57 }
 0x144   : > { %v1587_v58 = vld [vmem:[#allocation3] sm:$0x1]  ;;  %v1590_v59 = vld [vmem:[#allocation3 + $0x1] sm:$0x1]  ;;  %v1592_v60 = vld [vmem:[#allocation3 + $0x2] sm:$0x1] }
 0x145   : > { %1589 = vst.msk [vmem:[%s161_s9] sm:$0x1] %vm1588_vm4, %v1587_v58  ;;  %1591 = vst.msk [vmem:[%s161_s9 + $0x1] sm:$0x1] %vm1588_vm4, %v1590_v59  ;;  %v1594_v61 = vld [vmem:[#allocation3 + $0x3] sm:$0x1] }
 0x146   : > { %1593 = vst.msk [vmem:[%s161_s9 + $0x2] sm:$0x1] %vm1588_vm4, %v1592_v60  ;;  %v1596_v62 = vld [vmem:[#allocation3 + $0x4] sm:$0x1]  ;;  %1595 = vst.msk [vmem:[%s161_s9 + $0x3] sm:$0x1] %vm1588_vm4, %v1594_v61 }
 0x147   : > { %1597 = vst.msk [vmem:[%s161_s9 + $0x4] sm:$0x1] %vm1588_vm4, %v1596_v62 }
 0x148 PF: > { %p12_p9 = scmp.ge.s32.totalorder %s2008_s14, 10   ;;  %s2309_s9 = smov %s1956_s10 }
 0x149   : > { %s2310_s10 = smov %s1960_s11  ;;  %s2311_s11 = smov %s2018_s17 }
 0x14a   : > { %s2312_s12 = smov %s2008_s14  ;;  %14 = sbr.rel (!%p12_p9) target bundleno = 3 (0x3), region = 70 }
 0x14f   :  { %1617 = vsyncpa [#allocation5], 1 }
 0x150   :  { %1619 = vsyncpa [#allocation5 + $0x1], 1 }

</bundles_post_ra>
